<compile_context>
chip_gen: v5e
topology: v5e:2x2
jax: 0.10.0
libtpu: 0.0.40
codegen_flags: <defaults>
</compile_context>

<pallas_src>
import functools

import jax
import jax.numpy as jnp
from jax.experimental import pallas as pl
from jax.experimental.pallas import tpu as pltpu

_LANES = 128


def _round_up(a: int, b: int) -> int:
    return ((a + b - 1) // b) * b


def _device_kind() -> str:
    try:
        return jax.devices()[0].device_kind.lower()
    except Exception:
        return ""


def _partial_sums_kernel(x_ref, y_ref, o_ref, *, tile_rows: int,
                         valid_rows: int, needs_mask: bool):
    """One grid step: per-lane partial sums for one (tile_rows, 128) block."""

    def emit(x, y):
        d = y - x
        # Sublane-only reductions; the tiny cross-lane fold happens once in the
        # wrapper.  One contiguous (1, 3, 128) store per grid step (no masked
        # single-row vst's).  If a bundle dump ever shows Mosaic re-traversing
        # the block three times, restructure as a fori_loop over 8-row chunks.
        sdd = jnp.sum(d * d, axis=0, keepdims=True)   # sum((Y-X)^2) per lane
        sy = jnp.sum(y, axis=0, keepdims=True)        # sum(Y)       per lane
        syy = jnp.sum(y * y, axis=0, keepdims=True)   # sum(Y^2)     per lane
        o_ref[...] = jnp.concatenate([sdd, sy, syy], axis=0)[None]

    if not needs_mask:
        emit(x_ref[...].astype(jnp.float32), y_ref[...].astype(jnp.float32))
        return

    is_last = pl.program_id(0) == pl.num_programs(0) - 1

    @pl.when(jnp.logical_not(is_last))
    def _():
        # Fast path: interior blocks are fully valid -> no mask arithmetic.
        emit(x_ref[...].astype(jnp.float32), y_ref[...].astype(jnp.float32))

    @pl.when(is_last)
    def _():
        # The last block overhangs the (rows, 128) array: overhang rows hold
        # unspecified data (possibly NaN/Inf), so select-to-zero BEFORE any
        # arithmetic (zeros contribute nothing to the sums).
        x = x_ref[...].astype(jnp.float32)
        y = y_ref[...].astype(jnp.float32)
        row0 = pl.program_id(0) * tile_rows
        row_ids = jax.lax.broadcasted_iota(jnp.int32, (tile_rows, _LANES), 0) + row0
        valid = row_ids < valid_rows
        zero = jnp.float32(0.0)
        emit(jnp.where(valid, x, zero), jnp.where(valid, y, zero))


def _partial_sums(x2, y2, rows: int):
    """Pallas call: global per-lane partials [sum((Y-X)^2), sum(Y), sum(Y^2)]."""
    itemsize = jnp.dtype(x2.dtype).itemsize
    # Native sublane granularity: 8 rows f32, 16 bf16/f16, 32 for 8-bit.
    sublane = 8 * max(1, 4 // max(1, itemsize))

    kind = _device_kind()
    is_v5e = ("v5 lite" in kind) or ("v5e" in kind) or ("v5lite" in kind)
    multi_tc = any(t in kind for t in ("v4", "v5p", "v7"))  # 2 TensorCores/chip

    # Constant-byte tiles so the ~0.35 us per-grid-step overhead stays small
    # for every dtype: ~4 MiB/block on v6e/v7x, ~2 MiB/block on v5e.
    target_bytes = (2 << 20) if is_v5e else (4 << 20)
    tile_rows = max(sublane,
                    (target_bytes // (_LANES * itemsize)) // sublane * sublane)
    tile_rows = min(tile_rows, _round_up(rows, sublane))

    if multi_tc and rows * _LANES * itemsize > (1 << 20):
        # Guarantee the "parallel" grid axis has >= 2 (even) blocks so both
        # TensorCores get balanced work on megacore parts.
        n_t = pl.cdiv(rows, tile_rows)
        n_t = max(2, n_t + (n_t % 2))
        tile_rows = min(tile_rows, _round_up(pl.cdiv(rows, n_t), sublane))

    num_tiles = pl.cdiv(rows, tile_rows)
    needs_mask = (rows % tile_rows) != 0

    kernel = functools.partial(
        _partial_sums_kernel,
        tile_rows=tile_rows,
        valid_rows=rows,
        needs_mask=needs_mask,
    )

    n_main = rows * _LANES
    cost = pl.CostEstimate(
        flops=8 * n_main,
        transcendentals=0,
        bytes_accessed=2 * n_main * itemsize + num_tiles * 3 * _LANES * 4,
    )

    partials = pl.pallas_call(
        kernel,
        out_shape=jax.ShapeDtypeStruct((num_tiles, 3, _LANES), jnp.float32),
        grid=(num_tiles,),
        in_specs=[
            pl.BlockSpec((tile_rows, _LANES), lambda i: (i, 0)),
            pl.BlockSpec((tile_rows, _LANES), lambda i: (i, 0)),
        ],
        out_specs=pl.BlockSpec((1, 3, _LANES), lambda i: (i, 0, 0)),
        compiler_params=pltpu.CompilerParams(
            dimension_semantics=("parallel",),
            vmem_limit_bytes=32 * 1024 * 1024,
        ),
        cost_estimate=cost,
    )(x2, y2)

    return jnp.sum(partials, axis=(0, 2))  # (3,)


def r2_loss(x, y):
    """Pallas TPU implementation of R2_loss.forward(X, Y)."""
    assert x.shape == y.shape, "X and Y must have the same shape"
    n = x.size
    assert n > 0

    xf = x.reshape(-1)
    yf = y.reshape(-1)

    rem = n % _LANES
    main = n - rem

    # Sub-128-element tail: summed in plain JAX (reads < 128 elements, no
    # measurable HBM cost).  This removes the full-array jnp.pad copy that
    # previously doubled HBM traffic for non-multiple-of-128 sizes.
    if rem:
        xt = xf[main:].astype(jnp.float32)
        yt = yf[main:].astype(jnp.float32)
        dt = yt - xt
        tail = jnp.stack([jnp.sum(dt * dt), jnp.sum(yt), jnp.sum(yt * yt)])
    else:
        tail = jnp.zeros((3,), jnp.float32)

    if main > 0:
        rows = main // _LANES
        x2 = (xf if rem == 0 else xf[:main]).reshape(rows, _LANES)
        y2 = (yf if rem == 0 else yf[:main]).reshape(rows, _LANES)
        sums = _partial_sums(x2, y2, rows) + tail
    else:
        sums = tail  # n < 128: nothing left for the kernel

    s_a, s_y, s_yy = sums[0], sums[1], sums[2]
    n_f = jnp.float32(n)
    b = s_yy - (s_y * s_y) / n_f           # == sum((Y - mean(Y))^2)
    return jnp.float32(1.0) - s_a / b


if __name__ == "__main__":
    key = jax.random.PRNGKey(0)
    kx, ky = jax.random.split(key)
    shape = (2, 4, 16, 16)  # NCHW, small synthetic shapes
    X = jax.random.normal(kx, shape, dtype=jnp.float32)
    Y = jax.random.normal(ky, shape, dtype=jnp.float32)

    r2 = jax.block_until_ready(r2_loss(X, Y))

    # Pure-JAX reference mirroring the PyTorch module exactly.
    a_ref = jnp.sum((Y - X) ** 2)
    v_m = jnp.mean(Y)
    b_ref = jnp.sum((Y - v_m) ** 2)
    ref = 1.0 - a_ref / b_ref
    assert jnp.allclose(r2, ref, rtol=1e-5, atol=1e-5), (r2, ref)

    print("KERNEL_OK")
</pallas_src>

<mosaic_0001>
module attributes {stable_mosaic.version = 11 : i64} {
  func.func @_partial_sums_kernel(%arg0: i32, %arg1: memref<16x128xf32, #tpu.memory_space<vmem>>, %arg2: memref<16x128xf32, #tpu.memory_space<vmem>>, %arg3: memref<1x3x128xf32, #tpu.memory_space<vmem>>) attributes {dimension_semantics = [#tpu.dimension_semantics<parallel>], iteration_bounds = array<i64: 1>, scalar_prefetch = 0 : i64, scratch_operands = 0 : i64, tpu.core_type = #tpu.core_type<tc>, window_params = [{transform_indices = @transform_0, window_bounds = array<i64: 16, 128>}, {transform_indices = @transform_1, window_bounds = array<i64: 16, 128>}, {transform_indices = @transform_2, window_bounds = array<i64: 1, 3, 128>}]} {
    %c0 = arith.constant 0 : index
    %c0_0 = arith.constant 0 : index
    %0 = vector.load %arg1[%c0, %c0_0] : memref<16x128xf32, #tpu.memory_space<vmem>>, vector<16x128xf32>
    %c0_1 = arith.constant 0 : index
    %c0_2 = arith.constant 0 : index
    %1 = vector.load %arg2[%c0_1, %c0_2] : memref<16x128xf32, #tpu.memory_space<vmem>>, vector<16x128xf32>
    %2 = arith.subf %1, %0 : vector<16x128xf32>
    %3 = arith.mulf %2, %2 : vector<16x128xf32>
    %cst = arith.constant dense<0.000000e+00> : vector<128xf32>
    %4 = vector.multi_reduction <add>, %3, %cst [0] : vector<16x128xf32> to vector<128xf32>
    %5 = vector.shape_cast %4 : vector<128xf32> to vector<1x128xf32>
    %cst_3 = arith.constant dense<0.000000e+00> : vector<128xf32>
    %6 = vector.multi_reduction <add>, %1, %cst_3 [0] : vector<16x128xf32> to vector<128xf32>
    %7 = vector.shape_cast %6 : vector<128xf32> to vector<1x128xf32>
    %8 = arith.mulf %1, %1 : vector<16x128xf32>
    %cst_4 = arith.constant dense<0.000000e+00> : vector<128xf32>
    %9 = vector.multi_reduction <add>, %8, %cst_4 [0] : vector<16x128xf32> to vector<128xf32>
    %10 = vector.shape_cast %9 : vector<128xf32> to vector<1x128xf32>
    %11 = tpu.concatenate %5, %7, %10 in 0 : vector<1x128xf32>, vector<1x128xf32>, vector<1x128xf32> -> vector<3x128xf32>
    %12 = vector.shape_cast %11 : vector<3x128xf32> to vector<1x3x128xf32>
    %c0_5 = arith.constant 0 : index
    %c0_6 = arith.constant 0 : index
    %c0_7 = arith.constant 0 : index
    %13 = vector.load %arg3[%c0_5, %c0_6, %c0_7] : memref<1x3x128xf32, #tpu.memory_space<vmem>>, vector<1x3x128xf32>
    tpu.vector_store %arg3[%c0_5, %c0_6, %c0_7], %12 {strides = array<i32>} : memref<1x3x128xf32, #tpu.memory_space<vmem>>, vector<1x3x128xf32>,
    return
  }
  func.func @transform_0(%arg0: i32) -> (i32, i32) {
    %c0_i32 = arith.constant 0 : i32
    %c0_i32_0 = arith.constant 0 : i32
    return %arg0, %c0_i32 : i32, i32
  }
  func.func @transform_1(%arg0: i32) -> (i32, i32) {
    %c0_i32 = arith.constant 0 : i32
    %c0_i32_0 = arith.constant 0 : i32
    return %arg0, %c0_i32 : i32, i32
  }
  func.func @transform_2(%arg0: i32) -> (i32, i32, i32) {
    %c0_i32 = arith.constant 0 : i32
    %c0_i32_0 = arith.constant 0 : i32
    %c0_i32_1 = arith.constant 0 : i32
    return %arg0, %c0_i32, %c0_i32_0 : i32, i32, i32
  }
}

</mosaic_0001>

<bundles_post_ra>
// kernel: tpu_custom_call.1
= control target key start
LH: loop header
LB: loop body
LE: loop exit
PB: predicated region body
PF: predicated region fallthrough
CT: control target
= control target key end

     0   :  { %7 = vsyncpa [#allocation3], 0  ;;  %s169_s0 = inlined_call_operand.hbm [shape: f32[16,128], index: 0, kind: input, shape index: {}]   ;;  %s170_s1 = inlined_call_operand.hbm [shape: f32[16,128], index: 1, kind: input, shape index: {}]   ;;  %s171_s2 = inlined_call_operand.vmem [shape: f32[1,3,128], index: 2, kind: output, shape index: {}]  }
   0x1   :  { %s13_s11 = sshll.u32 %s169_s0, 4  ;;  %s14_s11 = int_to_ptr.hbm [resolvable:$true] %s13_s11 }
   0x2   :  { %8 = vsyncpa [#allocation5], 0  ;;  %s141_s12 = smov [#allocation2]   ;;  %s26_s16 = sshll.u32 %s170_s1, 4  ;;  %s27_s16 = int_to_ptr.hbm [resolvable:$true] %s26_s16 }
   0x3   :  { %s15_s13 = sshll.u32 %s141_s12, 4  ;;  %s142_s17 = smov 128   ;;  %s16_s13 = int_to_ptr.vmem [resolvable:$true] %s15_s13 }
   0x4   :  { %s143_s18 = smov 8   ;;  %s144_s19 = smov [#allocation4]  }
   0x5   :  { %21 = dma.hbm_to_vmem [thread:$0]  %s14_s11, 256, %s16_s13, [#allocation3], %s142_s17, %s142_s17, %s143_s18  }
   0x6   :  { %s28_s20 = sshll.u32 %s144_s19, 4  ;;  %s29_s20 = int_to_ptr.vmem [resolvable:$true] %s28_s20 }
   0x7   :  { %34 = dma.hbm_to_vmem [thread:$0]  %s27_s16, 256, %s29_s20, [#allocation5], %s142_s17, %s142_s17, %s143_s18  }
   0x8   :  { %137 = dma.done.wait [#allocation3], 256  }
   0x9   :  { %138 = vsyncadd [#allocation3], 4294967040 }
   0xa   :  { %139 = dma.done.wait [#allocation5], 256  }
   0xb   :  { %140 = vsyncadd [#allocation5], 4294967040  ;;  %v43_v0 = vld [vmem:[#allocation2] sm:$0xff]  ;;  %v44_v1 = vld [vmem:[#allocation2 + $0x8] sm:$0xff]  ;;  %vm74_vm0 = vcmask 1040384   ;;  %vm76_vm1 = vcmask 1041408  }
   0xc   :  { %v45_v2 = vld [vmem:[#allocation4] sm:$0xff]  ;;  %v46_v3 = vld [vmem:[#allocation4 + $0x8] sm:$0xff] }
   0xd   :  { %v47_v4 = vsub.f32 %v45_v2, %v43_v0  ;;  %v65_v5 = vmul.f32 %v45_v2, %v45_v2  ;;  %v48_v6 = vsub.f32 %v46_v3, %v44_v1  ;;  %v58_v7 = vadd.f32 %v46_v3, %v45_v2 }
   0xe   :  { %v66_v8 = vmul.f32 %v46_v3, %v46_v3 }
   0xf   :  { %v49_v9 = vmul.f32 %v47_v4, %v47_v4  ;;  %v50_v10 = vmul.f32 %v48_v6, %v48_v6  ;;  %v59_v11 = vrot.slane %v58_v7, 4 }
  0x10   :  { %v67_v12 = vadd.f32 %v66_v8, %v65_v5 }
  0x11   :  { %v51_v13 = vadd.f32 %v50_v10, %v49_v9  ;;  %v60_v14 = vadd.f32 %v59_v11, %v58_v7 }
  0x12   :  { %v68_v15 = vrot.slane %v67_v12, 4 }
  0x13   :  { %v52_v16 = vrot.slane %v51_v13, 4  ;;  %v61_v17 = vrot.slane %v60_v14, 2 }
  0x14   :  { %v69_v18 = vadd.f32 %v68_v15, %v67_v12 }
  0x15   :  { %v53_v19 = vadd.f32 %v52_v16, %v51_v13  ;;  %v62_v20 = vadd.f32 %v61_v17, %v60_v14 }
  0x16   :  { %v70_v21 = vrot.slane %v69_v18, 2 }
  0x17   :  { %v54_v22 = vrot.slane %v53_v19, 2  ;;  %v63_v23 = vrot.slane %v62_v20, 1 }
  0x18   :  { %v71_v24 = vadd.f32 %v70_v21, %v69_v18 }
  0x19   :  { %v55_v25 = vadd.f32 %v54_v22, %v53_v19  ;;  %v64_v28 = vadd.f32 %v63_v23, %v62_v20 }
  0x1a   :  { %v72_v26 = vrot.slane %v71_v24, 1 }
  0x1b   :  { %v56_v27 = vrot.slane %v55_v25, 1 }
  0x1c   :  { %v73_v29 = vadd.f32 %v72_v26, %v71_v24 }
  0x1d   :  { %v57_v30 = vadd.f32 %v56_v27, %v55_v25 }
  0x1f   :  { %v75_v31 = vsel %vm74_vm0, %v57_v30, %v64_v28 }
  0x20   :  { %v77_v32 = vsel %vm76_vm1, %v75_v31, %v73_v29 }
  0x21   :  { %78 = vst [vmem:[%s171_s2] sm:$0x7] %v77_v32 }
  0x22   :  { %83 = vsyncpa [#allocation3], 1 }
  0x23   :  { %84 = vsyncpa [#allocation5], 1 }

</bundles_post_ra>
